<compile_context>
chip_gen: v7x
topology: tpu7x:2x2x1
jax: 0.10.0
libtpu: 0.0.40
codegen_flags: <defaults>
</compile_context>

<pallas_src>
import functools

import jax
import jax.numpy as jnp
from jax.experimental import pallas as pl
from jax.experimental.pallas import tpu as pltpu


def _round_up(x, m):
    return ((x + m - 1) // m) * m


def _pick_cout_tile(cout):
    """Tile Cout so per-step weight/output blocks stay VMEM-friendly (v7x: 64 MiB)."""
    if cout <= 512:
        return cout
    for t in (512, 256, 128):
        if cout % t == 0:
            return t
    return cout  # odd large sizes: keep full tile (rare); still correct.


def _glu_conv_kernel(x_ref, w1_ref, w2_ref, b1_ref, b2_ref, o_ref, *,
                     tap_offsets, out_len):
    """Fused conv + GLU for one (batch image, Cout tile).

    x_ref : (1, Cin, Lp)          flattened padded image (compute dtype)
    w1/w2 : (kh*kw, tCout, Cin)   per-tap weight slabs for the two gates
    b1/b2 : (tCout, 1)            f32 biases
    o_ref : (1, tCout, L)         L = Ho * Wp (junk columns sliced off outside)
    """
    tcout = w1_ref.shape[1]
    acc1 = jnp.zeros((tcout, out_len), jnp.float32)
    acc2 = jnp.zeros((tcout, out_len), jnp.float32)
    # Static unrolled loop over the kh*kw taps: each tap is a lane-shifted view
    # of the flattened padded image, contracted over Cin on the MXU.
    for t, off in enumerate(tap_offsets):
        xw = x_ref[0, :, pl.ds(off, out_len)]                 # (Cin, L)
        acc1 += jnp.dot(w1_ref[t], xw, preferred_element_type=jnp.float32)
        acc2 += jnp.dot(w2_ref[t], xw, preferred_element_type=jnp.float32)
    # f32 epilogue (exact sigmoid keeps the tight correctness tolerance).
    out1 = acc1 + b1_ref[...]
    gate = jax.nn.sigmoid(acc2 + b2_ref[...])
    o_ref[0] = (out1 * gate).astype(o_ref.dtype)


def glu2d_forward(x, weight, bias, kernel_size, *, compute_dtype=jnp.bfloat16):
    """GLU2D forward.

    x:      (B, Cin, H, W)          NCHW, like the PyTorch module
    weight: (2*Cout, Cin, kh, kw)   PyTorch Conv2d weight layout
    bias:   (2*Cout,)
    returns (B, Cout, Ho, Wo)       (same spatial size for odd kernels, stride 1)
    """
    B, Cin, H, W = x.shape
    two_cout, cin_w, kh, kw = weight.shape
    assert cin_w == Cin and (kh, kw) == tuple(kernel_size)
    Cout = two_cout // 2

    ph, pw = (kh - 1) // 2, (kw - 1) // 2
    Ho = H + 2 * ph - kh + 1
    Wo = W + 2 * pw - kw + 1
    Hp, Wp = H + 2 * ph, W + 2 * pw

    L = Ho * Wp                               # per-image output extent (keeps Wp-Wo junk cols)
    Lp = _round_up(Hp * Wp + (kw - 1), 128)   # flat padded image + tail so every tap window fits

    # --- cheap layout prep (all O(input) / O(params), no im2col blow-up) ---
    xp = jnp.pad(x, ((0, 0), (0, 0), (ph, ph), (pw, pw)))          # (B, Cin, Hp, Wp)
    x_flat = xp.reshape(B, Cin, Hp * Wp)
    x_flat = jnp.pad(x_flat, ((0, 0), (0, 0), (0, Lp - Hp * Wp)))
    x_flat = x_flat.astype(compute_dtype)

    # weight (2*Cout, Cin, kh, kw) -> per-gate, per-tap slabs (kh*kw, Cout, Cin)
    wg = weight.reshape(2, Cout, Cin, kh, kw)
    wg = jnp.transpose(wg, (0, 3, 4, 1, 2)).reshape(2, kh * kw, Cout, Cin)
    w1 = wg[0].astype(compute_dtype)
    w2 = wg[1].astype(compute_dtype)
    b1 = bias[:Cout].reshape(Cout, 1).astype(jnp.float32)
    b2 = bias[Cout:].reshape(Cout, 1).astype(jnp.float32)

    tap_offsets = tuple(i * Wp + j for i in range(kh) for j in range(kw))
    T = kh * kw
    tcout = _pick_cout_tile(Cout)
    grid = (B, Cout // tcout)

    # TODO(synk): for images where Cin*Hp*Wp exceeds the VMEM budget (e.g. large
    # Cin / large spatial on v7x's 64 MiB), add a row-tiled variant that DMAs
    # overlapping row windows manually (memory_space=pl.ANY) and/or a
    # Cin-reduction grid axis with a VMEM f32 accumulator.

    kernel = functools.partial(_glu_conv_kernel,
                               tap_offsets=tap_offsets, out_len=L)

    out_flat = pl.pallas_call(
        kernel,
        out_shape=jax.ShapeDtypeStruct((B, Cout, L), x.dtype),
        grid_spec=pltpu.PrefetchScalarGridSpec(
            num_scalar_prefetch=0,
            grid=grid,
            in_specs=[
                pl.BlockSpec((1, Cin, Lp), lambda b, c: (b, 0, 0)),
                pl.BlockSpec((T, tcout, Cin), lambda b, c: (0, c, 0)),
                pl.BlockSpec((T, tcout, Cin), lambda b, c: (0, c, 0)),
                pl.BlockSpec((tcout, 1), lambda b, c: (c, 0)),
                pl.BlockSpec((tcout, 1), lambda b, c: (c, 0)),
            ],
            out_specs=pl.BlockSpec((1, tcout, L), lambda b, c: (b, c, 0)),
        ),
        compiler_params=pltpu.CompilerParams(
            dimension_semantics=("parallel", "parallel"),
            vmem_limit_bytes=32 * 1024 * 1024,
        ),
    )(x_flat, w1, w2, b1, b2)

    # Drop the (Wp - Wo) junk columns per row; output is already NCHW.
    out = out_flat.reshape(B, Cout, Ho, Wp)[:, :, :, :Wo]
    return out


if __name__ == "__main__":
    # Small deterministic setup consistent with the module.
    B, Cin, H, W = 2, 4, 16, 16
    Cout = 4
    kernel_size = (3, 3)
    kh, kw = kernel_size

    key = jax.random.PRNGKey(0)
    kx, kw_, kb = jax.random.split(key, 3)

    x = jax.random.normal(kx, (B, Cin, H, W), dtype=jnp.float32)
    fan_in = Cin * kh * kw
    bound = 1.0 / (fan_in ** 0.5)
    weight = jax.random.uniform(kw_, (2 * Cout, Cin, kh, kw),
                                minval=-bound, maxval=bound, dtype=jnp.float32)
    bias = jax.random.uniform(kb, (2 * Cout,),
                              minval=-bound, maxval=bound, dtype=jnp.float32)

    def reference(xr, wr, br):
        conv = jax.lax.conv_general_dilated(
            xr, wr, window_strides=(1, 1),
            padding=(((kh - 1) // 2, (kh - 1) // 2),
                     ((kw - 1) // 2, (kw - 1) // 2)),
            dimension_numbers=("NCHW", "OIHW", "NCHW"),
            preferred_element_type=jnp.float32,
        ) + br.reshape(1, -1, 1, 1).astype(jnp.float32)
        r1, r2 = conv[:, :Cout], conv[:, Cout:]
        return r1 * jax.nn.sigmoid(r2)

    # Exact path (f32 matmul) against the f32 reference: tight tolerance.
    fwd_f32 = jax.jit(functools.partial(glu2d_forward, kernel_size=kernel_size,
                                        compute_dtype=jnp.float32))
    out_f32 = jax.block_until_ready(fwd_f32(x, weight, bias))
    ref_f32 = reference(x, weight, bias)
    assert out_f32.shape == (B, Cout, H, W), out_f32.shape
    assert jnp.allclose(out_f32, ref_f32, atol=1e-5, rtol=1e-5)

    # Fast path (bf16 MXU inputs, f32 accumulation/epilogue) against an
    # identically-quantized reference.
    fwd_bf16 = jax.jit(functools.partial(glu2d_forward, kernel_size=kernel_size,
                                         compute_dtype=jnp.bfloat16))
    out_bf16 = jax.block_until_ready(fwd_bf16(x, weight, bias))
    ref_bf16 = reference(x.astype(jnp.bfloat16).astype(jnp.float32),
                         weight.astype(jnp.bfloat16).astype(jnp.float32), bias)
    assert out_bf16.shape == (B, Cout, H, W), out_bf16.shape
    assert jnp.allclose(out_bf16, ref_bf16, atol=5e-3, rtol=5e-3)

    print("KERNEL_OK")
</pallas_src>

<mosaic_0001>
module attributes {stable_mosaic.version = 11 : i64} {
  func.func @_glu_conv_kernel(%arg0: i32, %arg1: i32, %arg2: memref<1x4x384xf32, #tpu.memory_space<vmem>>, %arg3: memref<9x4x4xf32, #tpu.memory_space<vmem>>, %arg4: memref<9x4x4xf32, #tpu.memory_space<vmem>>, %arg5: memref<4x1xf32, #tpu.memory_space<vmem>>, %arg6: memref<4x1xf32, #tpu.memory_space<vmem>>, %arg7: memref<1x4x288xf32, #tpu.memory_space<vmem>>) attributes {dimension_semantics = [#tpu.dimension_semantics<parallel>, #tpu.dimension_semantics<parallel>], iteration_bounds = array<i64: 2, 1>, scalar_prefetch = 0 : i64, scratch_operands = 0 : i64, tpu.core_type = #tpu.core_type<tc>, window_params = [{transform_indices = @transform_0, window_bounds = array<i64: 1, 4, 384>}, {transform_indices = @transform_1, window_bounds = array<i64: 9, 4, 4>}, {transform_indices = @transform_2, window_bounds = array<i64: 9, 4, 4>}, {transform_indices = @transform_3, window_bounds = array<i64: 4, 1>}, {transform_indices = @transform_4, window_bounds = array<i64: 4, 1>}, {transform_indices = @transform_5, window_bounds = array<i64: 1, 4, 288>}]} {
    %cst = arith.constant 0.000000e+00 : f32
    %0 = vector.broadcast %cst : f32 to vector<4x288xf32>
    %cst_0 = arith.constant 0.000000e+00 : f32
    %1 = vector.broadcast %cst_0 : f32 to vector<4x288xf32>
    %c0 = arith.constant 0 : index
    %c0_1 = arith.constant 0 : index
    %c0_2 = arith.constant 0 : index
    %2 = vector.load %arg2[%c0, %c0_1, %c0_2] : memref<1x4x384xf32, #tpu.memory_space<vmem>>, vector<1x4x288xf32>
    %3 = vector.shape_cast %2 : vector<1x4x288xf32> to vector<4x288xf32>
    %c0_3 = arith.constant 0 : index
    %c0_4 = arith.constant 0 : index
    %c0_5 = arith.constant 0 : index
    %4 = vector.load %arg3[%c0_3, %c0_4, %c0_5] : memref<9x4x4xf32, #tpu.memory_space<vmem>>, vector<1x4x4xf32>
    %5 = vector.shape_cast %4 : vector<1x4x4xf32> to vector<4x4xf32>
    %cst_6 = arith.constant dense<0.000000e+00> : vector<4x288xf32>
    %6 = tpu.matmul %5, %3, %cst_6 {dimension_numbers = #tpu.dot_dimension_numbers<[1], [0], [0], [1], [0, 0, 1, 1], [], []>} : vector<4x4xf32>, vector<4x288xf32>, vector<4x288xf32> -> vector<4x288xf32>
    %7 = arith.addf %0, %6 : vector<4x288xf32>
    %c0_7 = arith.constant 0 : index
    %c0_8 = arith.constant 0 : index
    %c0_9 = arith.constant 0 : index
    %8 = vector.load %arg4[%c0_7, %c0_8, %c0_9] : memref<9x4x4xf32, #tpu.memory_space<vmem>>, vector<1x4x4xf32>
    %9 = vector.shape_cast %8 : vector<1x4x4xf32> to vector<4x4xf32>
    %cst_10 = arith.constant dense<0.000000e+00> : vector<4x288xf32>
    %10 = tpu.matmul %9, %3, %cst_10 {dimension_numbers = #tpu.dot_dimension_numbers<[1], [0], [0], [1], [0, 0, 1, 1], [], []>} : vector<4x4xf32>, vector<4x288xf32>, vector<4x288xf32> -> vector<4x288xf32>
    %11 = arith.addf %1, %10 : vector<4x288xf32>
    %c0_11 = arith.constant 0 : index
    %c0_12 = arith.constant 0 : index
    %c1 = arith.constant 1 : index
    %12 = vector.load %arg2[%c0_11, %c0_12, %c1] : memref<1x4x384xf32, #tpu.memory_space<vmem>>, vector<1x4x288xf32>
    %13 = vector.shape_cast %12 : vector<1x4x288xf32> to vector<4x288xf32>
    %c1_13 = arith.constant 1 : index
    %c0_14 = arith.constant 0 : index
    %c0_15 = arith.constant 0 : index
    %14 = vector.load %arg3[%c1_13, %c0_14, %c0_15] : memref<9x4x4xf32, #tpu.memory_space<vmem>>, vector<1x4x4xf32>
    %15 = vector.shape_cast %14 : vector<1x4x4xf32> to vector<4x4xf32>
    %cst_16 = arith.constant dense<0.000000e+00> : vector<4x288xf32>
    %16 = tpu.matmul %15, %13, %cst_16 {dimension_numbers = #tpu.dot_dimension_numbers<[1], [0], [0], [1], [0, 0, 1, 1], [], []>} : vector<4x4xf32>, vector<4x288xf32>, vector<4x288xf32> -> vector<4x288xf32>
    %17 = arith.addf %7, %16 : vector<4x288xf32>
    %c1_17 = arith.constant 1 : index
    %c0_18 = arith.constant 0 : index
    %c0_19 = arith.constant 0 : index
    %18 = vector.load %arg4[%c1_17, %c0_18, %c0_19] : memref<9x4x4xf32, #tpu.memory_space<vmem>>, vector<1x4x4xf32>
    %19 = vector.shape_cast %18 : vector<1x4x4xf32> to vector<4x4xf32>
    %cst_20 = arith.constant dense<0.000000e+00> : vector<4x288xf32>
    %20 = tpu.matmul %19, %13, %cst_20 {dimension_numbers = #tpu.dot_dimension_numbers<[1], [0], [0], [1], [0, 0, 1, 1], [], []>} : vector<4x4xf32>, vector<4x288xf32>, vector<4x288xf32> -> vector<4x288xf32>
    %21 = arith.addf %11, %20 : vector<4x288xf32>
    %c0_21 = arith.constant 0 : index
    %c0_22 = arith.constant 0 : index
    %c2 = arith.constant 2 : index
    %22 = vector.load %arg2[%c0_21, %c0_22, %c2] : memref<1x4x384xf32, #tpu.memory_space<vmem>>, vector<1x4x288xf32>
    %23 = vector.shape_cast %22 : vector<1x4x288xf32> to vector<4x288xf32>
    %c2_23 = arith.constant 2 : index
    %c0_24 = arith.constant 0 : index
    %c0_25 = arith.constant 0 : index
    %24 = vector.load %arg3[%c2_23, %c0_24, %c0_25] : memref<9x4x4xf32, #tpu.memory_space<vmem>>, vector<1x4x4xf32>
    %25 = vector.shape_cast %24 : vector<1x4x4xf32> to vector<4x4xf32>
    %cst_26 = arith.constant dense<0.000000e+00> : vector<4x288xf32>
    %26 = tpu.matmul %25, %23, %cst_26 {dimension_numbers = #tpu.dot_dimension_numbers<[1], [0], [0], [1], [0, 0, 1, 1], [], []>} : vector<4x4xf32>, vector<4x288xf32>, vector<4x288xf32> -> vector<4x288xf32>
    %27 = arith.addf %17, %26 : vector<4x288xf32>
    %c2_27 = arith.constant 2 : index
    %c0_28 = arith.constant 0 : index
    %c0_29 = arith.constant 0 : index
    %28 = vector.load %arg4[%c2_27, %c0_28, %c0_29] : memref<9x4x4xf32, #tpu.memory_space<vmem>>, vector<1x4x4xf32>
    %29 = vector.shape_cast %28 : vector<1x4x4xf32> to vector<4x4xf32>
    %cst_30 = arith.constant dense<0.000000e+00> : vector<4x288xf32>
    %30 = tpu.matmul %29, %23, %cst_30 {dimension_numbers = #tpu.dot_dimension_numbers<[1], [0], [0], [1], [0, 0, 1, 1], [], []>} : vector<4x4xf32>, vector<4x288xf32>, vector<4x288xf32> -> vector<4x288xf32>
    %31 = arith.addf %21, %30 : vector<4x288xf32>
    %c0_31 = arith.constant 0 : index
    %c0_32 = arith.constant 0 : index
    %c18 = arith.constant 18 : index
    %32 = vector.load %arg2[%c0_31, %c0_32, %c18] : memref<1x4x384xf32, #tpu.memory_space<vmem>>, vector<1x4x288xf32>
    %33 = vector.shape_cast %32 : vector<1x4x288xf32> to vector<4x288xf32>
    %c3 = arith.constant 3 : index
    %c0_33 = arith.constant 0 : index
    %c0_34 = arith.constant 0 : index
    %34 = vector.load %arg3[%c3, %c0_33, %c0_34] : memref<9x4x4xf32, #tpu.memory_space<vmem>>, vector<1x4x4xf32>
    %35 = vector.shape_cast %34 : vector<1x4x4xf32> to vector<4x4xf32>
    %cst_35 = arith.constant dense<0.000000e+00> : vector<4x288xf32>
    %36 = tpu.matmul %35, %33, %cst_35 {dimension_numbers = #tpu.dot_dimension_numbers<[1], [0], [0], [1], [0, 0, 1, 1], [], []>} : vector<4x4xf32>, vector<4x288xf32>, vector<4x288xf32> -> vector<4x288xf32>
    %37 = arith.addf %27, %36 : vector<4x288xf32>
    %c3_36 = arith.constant 3 : index
    %c0_37 = arith.constant 0 : index
    %c0_38 = arith.constant 0 : index
    %38 = vector.load %arg4[%c3_36, %c0_37, %c0_38] : memref<9x4x4xf32, #tpu.memory_space<vmem>>, vector<1x4x4xf32>
    %39 = vector.shape_cast %38 : vector<1x4x4xf32> to vector<4x4xf32>
    %cst_39 = arith.constant dense<0.000000e+00> : vector<4x288xf32>
    %40 = tpu.matmul %39, %33, %cst_39 {dimension_numbers = #tpu.dot_dimension_numbers<[1], [0], [0], [1], [0, 0, 1, 1], [], []>} : vector<4x4xf32>, vector<4x288xf32>, vector<4x288xf32> -> vector<4x288xf32>
    %41 = arith.addf %31, %40 : vector<4x288xf32>
    %c0_40 = arith.constant 0 : index
    %c0_41 = arith.constant 0 : index
    %c19 = arith.constant 19 : index
    %42 = vector.load %arg2[%c0_40, %c0_41, %c19] : memref<1x4x384xf32, #tpu.memory_space<vmem>>, vector<1x4x288xf32>
    %43 = vector.shape_cast %42 : vector<1x4x288xf32> to vector<4x288xf32>
    %c4 = arith.constant 4 : index
    %c0_42 = arith.constant 0 : index
    %c0_43 = arith.constant 0 : index
    %44 = vector.load %arg3[%c4, %c0_42, %c0_43] : memref<9x4x4xf32, #tpu.memory_space<vmem>>, vector<1x4x4xf32>
    %45 = vector.shape_cast %44 : vector<1x4x4xf32> to vector<4x4xf32>
    %cst_44 = arith.constant dense<0.000000e+00> : vector<4x288xf32>
    %46 = tpu.matmul %45, %43, %cst_44 {dimension_numbers = #tpu.dot_dimension_numbers<[1], [0], [0], [1], [0, 0, 1, 1], [], []>} : vector<4x4xf32>, vector<4x288xf32>, vector<4x288xf32> -> vector<4x288xf32>
    %47 = arith.addf %37, %46 : vector<4x288xf32>
    %c4_45 = arith.constant 4 : index
    %c0_46 = arith.constant 0 : index
    %c0_47 = arith.constant 0 : index
    %48 = vector.load %arg4[%c4_45, %c0_46, %c0_47] : memref<9x4x4xf32, #tpu.memory_space<vmem>>, vector<1x4x4xf32>
    %49 = vector.shape_cast %48 : vector<1x4x4xf32> to vector<4x4xf32>
    %cst_48 = arith.constant dense<0.000000e+00> : vector<4x288xf32>
    %50 = tpu.matmul %49, %43, %cst_48 {dimension_numbers = #tpu.dot_dimension_numbers<[1], [0], [0], [1], [0, 0, 1, 1], [], []>} : vector<4x4xf32>, vector<4x288xf32>, vector<4x288xf32> -> vector<4x288xf32>
    %51 = arith.addf %41, %50 : vector<4x288xf32>
    %c0_49 = arith.constant 0 : index
    %c0_50 = arith.constant 0 : index
    %c20 = arith.constant 20 : index
    %52 = vector.load %arg2[%c0_49, %c0_50, %c20] : memref<1x4x384xf32, #tpu.memory_space<vmem>>, vector<1x4x288xf32>
    %53 = vector.shape_cast %52 : vector<1x4x288xf32> to vector<4x288xf32>
    %c5 = arith.constant 5 : index
    %c0_51 = arith.constant 0 : index
    %c0_52 = arith.constant 0 : index
    %54 = vector.load %arg3[%c5, %c0_51, %c0_52] : memref<9x4x4xf32, #tpu.memory_space<vmem>>, vector<1x4x4xf32>
    %55 = vector.shape_cast %54 : vector<1x4x4xf32> to vector<4x4xf32>
    %cst_53 = arith.constant dense<0.000000e+00> : vector<4x288xf32>
    %56 = tpu.matmul %55, %53, %cst_53 {dimension_numbers = #tpu.dot_dimension_numbers<[1], [0], [0], [1], [0, 0, 1, 1], [], []>} : vector<4x4xf32>, vector<4x288xf32>, vector<4x288xf32> -> vector<4x288xf32>
    %57 = arith.addf %47, %56 : vector<4x288xf32>
    %c5_54 = arith.constant 5 : index
    %c0_55 = arith.constant 0 : index
    %c0_56 = arith.constant 0 : index
    %58 = vector.load %arg4[%c5_54, %c0_55, %c0_56] : memref<9x4x4xf32, #tpu.memory_space<vmem>>, vector<1x4x4xf32>
    %59 = vector.shape_cast %58 : vector<1x4x4xf32> to vector<4x4xf32>
    %cst_57 = arith.constant dense<0.000000e+00> : vector<4x288xf32>
    %60 = tpu.matmul %59, %53, %cst_57 {dimension_numbers = #tpu.dot_dimension_numbers<[1], [0], [0], [1], [0, 0, 1, 1], [], []>} : vector<4x4xf32>, vector<4x288xf32>, vector<4x288xf32> -> vector<4x288xf32>
    %61 = arith.addf %51, %60 : vector<4x288xf32>
    %c0_58 = arith.constant 0 : index
    %c0_59 = arith.constant 0 : index
    %c36 = arith.constant 36 : index
    %62 = vector.load %arg2[%c0_58, %c0_59, %c36] : memref<1x4x384xf32, #tpu.memory_space<vmem>>, vector<1x4x288xf32>
    %63 = vector.shape_cast %62 : vector<1x4x288xf32> to vector<4x288xf32>
    %c6 = arith.constant 6 : index
    %c0_60 = arith.constant 0 : index
    %c0_61 = arith.constant 0 : index
    %64 = vector.load %arg3[%c6, %c0_60, %c0_61] : memref<9x4x4xf32, #tpu.memory_space<vmem>>, vector<1x4x4xf32>
    %65 = vector.shape_cast %64 : vector<1x4x4xf32> to vector<4x4xf32>
    %cst_62 = arith.constant dense<0.000000e+00> : vector<4x288xf32>
    %66 = tpu.matmul %65, %63, %cst_62 {dimension_numbers = #tpu.dot_dimension_numbers<[1], [0], [0], [1], [0, 0, 1, 1], [], []>} : vector<4x4xf32>, vector<4x288xf32>, vector<4x288xf32> -> vector<4x288xf32>
    %67 = arith.addf %57, %66 : vector<4x288xf32>
    %c6_63 = arith.constant 6 : index
    %c0_64 = arith.constant 0 : index
    %c0_65 = arith.constant 0 : index
    %68 = vector.load %arg4[%c6_63, %c0_64, %c0_65] : memref<9x4x4xf32, #tpu.memory_space<vmem>>, vector<1x4x4xf32>
    %69 = vector.shape_cast %68 : vector<1x4x4xf32> to vector<4x4xf32>
    %cst_66 = arith.constant dense<0.000000e+00> : vector<4x288xf32>
    %70 = tpu.matmul %69, %63, %cst_66 {dimension_numbers = #tpu.dot_dimension_numbers<[1], [0], [0], [1], [0, 0, 1, 1], [], []>} : vector<4x4xf32>, vector<4x288xf32>, vector<4x288xf32> -> vector<4x288xf32>
    %71 = arith.addf %61, %70 : vector<4x288xf32>
    %c0_67 = arith.constant 0 : index
    %c0_68 = arith.constant 0 : index
    %c37 = arith.constant 37 : index
    %72 = vector.load %arg2[%c0_67, %c0_68, %c37] : memref<1x4x384xf32, #tpu.memory_space<vmem>>, vector<1x4x288xf32>
    %73 = vector.shape_cast %72 : vector<1x4x288xf32> to vector<4x288xf32>
    %c7 = arith.constant 7 : index
    %c0_69 = arith.constant 0 : index
    %c0_70 = arith.constant 0 : index
    %74 = vector.load %arg3[%c7, %c0_69, %c0_70] : memref<9x4x4xf32, #tpu.memory_space<vmem>>, vector<1x4x4xf32>
    %75 = vector.shape_cast %74 : vector<1x4x4xf32> to vector<4x4xf32>
    %cst_71 = arith.constant dense<0.000000e+00> : vector<4x288xf32>
    %76 = tpu.matmul %75, %73, %cst_71 {dimension_numbers = #tpu.dot_dimension_numbers<[1], [0], [0], [1], [0, 0, 1, 1], [], []>} : vector<4x4xf32>, vector<4x288xf32>, vector<4x288xf32> -> vector<4x288xf32>
    %77 = arith.addf %67, %76 : vector<4x288xf32>
    %c7_72 = arith.constant 7 : index
    %c0_73 = arith.constant 0 : index
    %c0_74 = arith.constant 0 : index
    %78 = vector.load %arg4[%c7_72, %c0_73, %c0_74] : memref<9x4x4xf32, #tpu.memory_space<vmem>>, vector<1x4x4xf32>
    %79 = vector.shape_cast %78 : vector<1x4x4xf32> to vector<4x4xf32>
    %cst_75 = arith.constant dense<0.000000e+00> : vector<4x288xf32>
    %80 = tpu.matmul %79, %73, %cst_75 {dimension_numbers = #tpu.dot_dimension_numbers<[1], [0], [0], [1], [0, 0, 1, 1], [], []>} : vector<4x4xf32>, vector<4x288xf32>, vector<4x288xf32> -> vector<4x288xf32>
    %81 = arith.addf %71, %80 : vector<4x288xf32>
    %c0_76 = arith.constant 0 : index
    %c0_77 = arith.constant 0 : index
    %c38 = arith.constant 38 : index
    %82 = vector.load %arg2[%c0_76, %c0_77, %c38] : memref<1x4x384xf32, #tpu.memory_space<vmem>>, vector<1x4x288xf32>
    %83 = vector.shape_cast %82 : vector<1x4x288xf32> to vector<4x288xf32>
    %c8 = arith.constant 8 : index
    %c0_78 = arith.constant 0 : index
    %c0_79 = arith.constant 0 : index
    %84 = vector.load %arg3[%c8, %c0_78, %c0_79] : memref<9x4x4xf32, #tpu.memory_space<vmem>>, vector<1x4x4xf32>
    %85 = vector.shape_cast %84 : vector<1x4x4xf32> to vector<4x4xf32>
    %cst_80 = arith.constant dense<0.000000e+00> : vector<4x288xf32>
    %86 = tpu.matmul %85, %83, %cst_80 {dimension_numbers = #tpu.dot_dimension_numbers<[1], [0], [0], [1], [0, 0, 1, 1], [], []>} : vector<4x4xf32>, vector<4x288xf32>, vector<4x288xf32> -> vector<4x288xf32>
    %87 = arith.addf %77, %86 : vector<4x288xf32>
    %c8_81 = arith.constant 8 : index
    %c0_82 = arith.constant 0 : index
    %c0_83 = arith.constant 0 : index
    %88 = vector.load %arg4[%c8_81, %c0_82, %c0_83] : memref<9x4x4xf32, #tpu.memory_space<vmem>>, vector<1x4x4xf32>
    %89 = vector.shape_cast %88 : vector<1x4x4xf32> to vector<4x4xf32>
    %cst_84 = arith.constant dense<0.000000e+00> : vector<4x288xf32>
    %90 = tpu.matmul %89, %83, %cst_84 {dimension_numbers = #tpu.dot_dimension_numbers<[1], [0], [0], [1], [0, 0, 1, 1], [], []>} : vector<4x4xf32>, vector<4x288xf32>, vector<4x288xf32> -> vector<4x288xf32>
    %91 = arith.addf %81, %90 : vector<4x288xf32>
    %c0_85 = arith.constant 0 : index
    %c0_86 = arith.constant 0 : index
    %92 = vector.load %arg5[%c0_85, %c0_86] : memref<4x1xf32, #tpu.memory_space<vmem>>, vector<4x1xf32>
    %93 = vector.broadcast %92 : vector<4x1xf32> to vector<4x288xf32>
    %94 = arith.addf %87, %93 : vector<4x288xf32>
    %c0_87 = arith.constant 0 : index
    %c0_88 = arith.constant 0 : index
    %95 = vector.load %arg6[%c0_87, %c0_88] : memref<4x1xf32, #tpu.memory_space<vmem>>, vector<4x1xf32>
    %96 = vector.broadcast %95 : vector<4x1xf32> to vector<4x288xf32>
    %97 = arith.addf %91, %96 : vector<4x288xf32>
    %98 = arith.negf %97 : vector<4x288xf32>
    %99 = math.exp %98 : vector<4x288xf32>
    %cst_89 = arith.constant 1.000000e+00 : f32
    %100 = vector.broadcast %cst_89 : f32 to vector<4x288xf32>
    %101 = arith.addf %100, %99 : vector<4x288xf32>
    %102 = arith.divf %100, %101 : vector<4x288xf32>
    %103 = arith.mulf %94, %102 : vector<4x288xf32>
    %c0_90 = arith.constant 0 : index
    %c0_91 = arith.constant 0 : index
    %c0_92 = arith.constant 0 : index
    %104 = vector.load %arg7[%c0_90, %c0_91, %c0_92] : memref<1x4x288xf32, #tpu.memory_space<vmem>>, vector<1x4x288xf32>
    %105 = vector.shape_cast %104 : vector<1x4x288xf32> to vector<4x288xf32>
    %106 = vector.shape_cast %103 : vector<4x288xf32> to vector<1x4x288xf32>
    tpu.vector_store %arg7[%c0_90, %c0_91, %c0_92], %106 {strides = array<i32>} : memref<1x4x288xf32, #tpu.memory_space<vmem>>, vector<1x4x288xf32>,
    return
  }
  func.func @transform_0(%arg0: i32, %arg1: i32) -> (i32, i32, i32) {
    %c0_i32 = arith.constant 0 : i32
    %c0_i32_0 = arith.constant 0 : i32
    %c0_i32_1 = arith.constant 0 : i32
    return %arg0, %c0_i32, %c0_i32_0 : i32, i32, i32
  }
  func.func @transform_1(%arg0: i32, %arg1: i32) -> (i32, i32, i32) {
    %c0_i32 = arith.constant 0 : i32
    %c0_i32_0 = arith.constant 0 : i32
    %c0_i32_1 = arith.constant 0 : i32
    return %c0_i32, %arg1, %c0_i32_0 : i32, i32, i32
  }
  func.func @transform_2(%arg0: i32, %arg1: i32) -> (i32, i32, i32) {
    %c0_i32 = arith.constant 0 : i32
    %c0_i32_0 = arith.constant 0 : i32
    %c0_i32_1 = arith.constant 0 : i32
    return %c0_i32, %arg1, %c0_i32_0 : i32, i32, i32
  }
  func.func @transform_3(%arg0: i32, %arg1: i32) -> (i32, i32) {
    %c0_i32 = arith.constant 0 : i32
    %c0_i32_0 = arith.constant 0 : i32
    return %arg1, %c0_i32 : i32, i32
  }
  func.func @transform_4(%arg0: i32, %arg1: i32) -> (i32, i32) {
    %c0_i32 = arith.constant 0 : i32
    %c0_i32_0 = arith.constant 0 : i32
    return %arg1, %c0_i32 : i32, i32
  }
  func.func @transform_5(%arg0: i32, %arg1: i32) -> (i32, i32, i32) {
    %c0_i32 = arith.constant 0 : i32
    %c0_i32_0 = arith.constant 0 : i32
    return %arg0, %arg1, %c0_i32 : i32, i32, i32
  }
}

</mosaic_0001>

<bundles_post_ra>
// kernel: glu2d_forward.1
= control target key start
LH: loop header
LB: loop body
LE: loop exit
PB: predicated region body
PF: predicated region fallthrough
CT: control target
= control target key end

     0   :  { %s3737_s18 = smov 0   ;;  %s3739_s19 = smov 0   ;;  %s4043_s0 = inlined_call_operand.vmem [shape: f32[2,4,384], index: 0, kind: input, shape index: {}]   ;;  %s4044_s1 = inlined_call_operand.vmem [shape: f32[9,4,4], index: 1, kind: input, shape index: {}]   ;;  %s4045_s2 = inlined_call_operand.vmem [shape: f32[9,4,4], index: 2, kind: input, shape index: {}]   ;;  %s4046_s3 = inlined_call_operand.vmem [shape: f32[4,1], index: 3, kind: input, shape index: {}]   ;;  %s4047_s4 = inlined_call_operand.vmem [shape: f32[4,1], index: 4, kind: input, shape index: {}]   ;;  %s4048_s5 = inlined_call_operand.vmem [shape: f32[2,4,288], index: 5, kind: output, shape index: {}]  }
   0x1   :  { %s3741_s20 = smov 0  }
   0x2 LB: > { %s27_s21 = sadd.s32 1, %s3690_s19  ;;  %p3349_p0 = scmp.ge.s32.totalorder %s3694_s20, 1  ;;  %s3694_s20 = sphi %s3741_s20, %s15_s20   ;;  %s3690_s19 = sphi %s3739_s19, %s4050_s19   ;;  %s3686_s18 = sphi %s3737_s18, %s4049_s18  }
   0x3   : > { %p29_p1 = scmp.ge.s32.totalorder %s27_s21, 2  ;;  %p237_p2 = scmp.lt.s32.totalorder %s3694_s20, 3 }
   0x5   : > { %s4052_s21 = smov (%p29_p1, %s27_s21), 0  ;;  %p238_p3 = pnand %p3349_p0, %p237_p2 }
   0x6   : > { %p285_p4 = scmp.lt.s32.totalorder (!%p238_p3), %s3686_s18, 1  ;;  %v3696_v0 = vmov (!%p238_p3), 0.0   ;;  %vm3697_vm0 = vmmov (!%p238_p3), 0   ;;  %s3698_s26 = smov (!%p238_p3), 127   ;;  %v3151_v11 = vld [vmem:[%s4046_s3] sm:$0xf] (!%p238_p3) }
   0x7   : > { %241 = sbr.rel (%p238_p3) target bundleno = 465 (0x1d1), region = 40  ;;  %3499 = vmatprep.subr.mxu1 (!%p238_p3), %v3696_v0  ;;  %3501 = vmatprep.mubr.msk.f32.mxu1 (!%p238_p3), %vm3697_vm0, %v3696_v0  ;;  %s3699_s27 = smov (!%p238_p3), 126   ;;  %v3160_v12 = vld [vmem:[%s4047_s4] sm:$0xf] (!%p238_p3)  ;;  %v3706_v13 = vmov (!%p238_p3), 0   ;;  %vm337_vm1 = vcmask (!%p238_p3), 1043456  }
   0x8   : > { %408 = vmatprep.mubr.f32.mxu0 (!%p238_p3), %v3696_v0  ;;  %s3700_s28 = smov (!%p238_p3), 110   ;;  %s3701_s29 = smov (!%p238_p3), 109   ;;  %3658 = vset.pattern.permute.xlu1 (!%p238_p3), %v3706_v13  ;;  %vm330_vm2 = vcmask (!%p238_p3), 1039360   ;;  %v3352_v16 = vld [vmem:[%s4044_s1 + $0x4] sm:$0xf] (!%p238_p3)  ;;  %vm333_vm3 = vcmask (!%p238_p3), 31744  }
   0x9   : > { %s3702_s30 = smov (!%p238_p3), 108   ;;  %s3703_s6 = smov (!%p238_p3), 92   ;;  %3657 = vset.pattern.permute.xlu0 (!%p238_p3), %v3706_v13  ;;  %v317_v20 = vld [vmem:[%s4044_s1] sm:$0xf] (!%p238_p3)  ;;  %v3363_v21 = vld [vmem:[%s4045_s2 + $0x4] sm:$0xf] (!%p238_p3) }
   0xa   : > { %s3704_s7 = smov (!%p238_p3), 91   ;;  %s3705_s8 = smov (!%p238_p3), 90   ;;  %v318_v23 = vld [vmem:[%s4045_s2] sm:$0xf] (!%p238_p3)  ;;  %vm938_vm4 = vcmask (!%p238_p3), 1031168   ;;  %vm1256_vm5 = vcmask (!%p238_p3), 900096  }
   0xb   : > { %v3374_v27 = vld [vmem:[%s4044_s1 + $0x8] sm:$0xf] (!%p238_p3)  ;;  %v3386_v33 = vld [vmem:[%s4044_s1 + $0xc] sm:$0xf] (!%p238_p3)  ;;  %v3398_v40 = vld [vmem:[%s4044_s1 + $0x10] sm:$0xf] (!%p238_p3) }
   0xc   : > { %v3380_v29 = vld [vmem:[%s4045_s2 + $0x8] sm:$0xf] (!%p238_p3)  ;;  %v3392_v36 = vld [vmem:[%s4045_s2 + $0xc] sm:$0xf] (!%p238_p3)  ;;  %vm1574_vm6 = vcmask (!%p238_p3), 891904   ;;  %vm1892_vm7 = vcmask (!%p238_p3), 883712  }
   0xd   : > { %v3404_v43 = vld [vmem:[%s4045_s2 + $0x10] sm:$0xf] (!%p238_p3)  ;;  %v3410_v47 = vld [vmem:[%s4044_s1 + $0x14] sm:$0xf] (!%p238_p3)  ;;  %v3422_v54 = vld [vmem:[%s4044_s1 + $0x18] sm:$0xf] (!%p238_p3) }
   0xe   : > { %s4054_s18 = smov (!%p285_p4, %s3686_s18), 1  ;;  %v3416_v50 = vld [vmem:[%s4045_s2 + $0x14] sm:$0xf]  ;;  %vm2210_vm8 = vcmask 752640   ;;  %v3428_v57 = vld [vmem:[%s4045_s2 + $0x18] sm:$0xf] }
   0xf   : > { %s3621_s22 = smul.u32 12, %s4054_s18  ;;  %v3434_v61 = vld [vmem:[%s4044_s1 + $0x1c] sm:$0xf]  ;;  %vm2528_vm9 = vcmask 744448   ;;  %vm2846_vm10 = vcmask 736256   ;;  %vm3195_vm11 = vcmask 257024  }
  0x10   : > { %v3440_v63 = vld [vmem:[%s4045_s2 + $0x1c] sm:$0xf] }
  0x11   : > { %s3767_s25 = scalar_lea.vmem %s4043_s0, %s3621_s22  ;;  %s314_s11 = scalar_lea.vmem %s4048_s5, %s3621_s22 }
  0x12   : > { %v3770_v1 = vld [vmem:[%s3767_s25] sm:$0xff]  ;;  %v3779_v3 = vld [vmem:[%s3767_s25 + $0x8] sm:$0xf] }
  0x13   : > { %324 = vrot.lane.b32.xlu1 %v3770_v1, %s3698_s26  ;;  %v3775_v2 = vcombine.high %v3770_v1, %v3770_v1  ;;  %v926_v4 = vld [vmem:[%s3767_s25 + $0x8] sm:$0xf] }
  0x14   : > { %v1244_v5 = vld [vmem:[%s3767_s25 + $0x8] sm:$0xf] }
  0x15   : > { %326 = vrot.lane.b32.xlu0 %v3775_v2, %s3698_s26  ;;  %v1562_v6 = vld [vmem:[%s3767_s25 + $0x8] sm:$0xf] }
  0x16   : > { %v1880_v7 = vld [vmem:[%s3767_s25 + $0x8] sm:$0xf] }
  0x17   : > { %934 = vrot.lane.b32.xlu1 %v3775_v2, %s3699_s27  ;;  %v2198_v8 = vld [vmem:[%s3767_s25 + $0x8] sm:$0xf] }
  0x18   : > { %v2516_v9 = vld [vmem:[%s3767_s25 + $0x8] sm:$0xf] }
  0x19   : > { %328 = vrot.lane.b32.xlu0 %v3779_v3, %s3698_s26  ;;  %v2834_v10 = vld [vmem:[%s3767_s25 + $0x8] sm:$0xf] }
  0x1b   : > { %932 = vrot.lane.b32.xlu1 %v3770_v1, %s3699_s27 }
  0x1d   : > { %936 = vrot.lane.b32.xlu0 %v926_v4, %s3699_s27  ;;  %v3446_v4 = vld [vmem:[%s4044_s1 + $0x20] sm:$0xf] }
  0x1f   : > { %1254 = vrot.lane.b32.xlu1 %v1244_v5, %s3700_s28 }
  0x21   : > { %1252 = vrot.lane.b32.xlu0 %v3775_v2, %s3700_s28 }
  0x23   : > { %1570 = vrot.lane.b32.xlu1 %v3775_v2, %s3701_s29 }
  0x25   : > { %1250 = vrot.lane.b32.xlu0 %v3770_v1, %s3700_s28 }
  0x27   : > { %1568 = vrot.lane.b32.xlu1 %v3770_v1, %s3701_s29 }
  0x29   : > { %1572 = vrot.lane.b32.xlu0 %v1562_v6, %s3701_s29 }
  0x2b   : > { %1890 = vrot.lane.b32.xlu1 %v1880_v7, %s3702_s30  ;;  %v3452_v7 = vld [vmem:[%s4045_s2 + $0x20] sm:$0xf] }
  0x2d   : > { %1888 = vrot.lane.b32.xlu0 %v3775_v2, %s3702_s30 }
  0x2f   : > { %2206 = vrot.lane.b32.xlu1 %v3775_v2, %s3703_s6 }
  0x31   : > { %1886 = vrot.lane.b32.xlu0 %v3770_v1, %s3702_s30 }
  0x33   : > { %2204 = vrot.lane.b32.xlu1 %v3770_v1, %s3703_s6 }
  0x35   : > { %2208 = vrot.lane.b32.xlu0 %v2198_v8, %s3703_s6 }
  0x37   : > { %2526 = vrot.lane.b32.xlu1 %v2516_v9, %s3704_s7 }
  0x39   : > { %2524 = vrot.lane.b32.xlu0 %v3775_v2, %s3704_s7 }
  0x3b   : > { %2842 = vrot.lane.b32.xlu1 %v3775_v2, %s3705_s8 }
  0x3d   : > { %2522 = vrot.lane.b32.xlu0 %v3770_v1, %s3704_s7 }
  0x3f   : > { %2840 = vrot.lane.b32.xlu1 %v3770_v1, %s3705_s8 }
  0x41   : > { %2844 = vrot.lane.b32.xlu0 %v2834_v10, %s3705_s8 }
  0x43   : > { %3154 = vperm.xlu1 %3658, %v3151_v11  }
  0x45   : > { %3163 = vperm.xlu0 %3657, %v3160_v12  }
  0x85   : > { %v325_v15 = vpop.permute.xlu1 %324 }
  0x87   : > { %v327_v14 = vpop.permute.xlu0 %326 }
  0x88   : > { %v331_v19 = vsel %vm330_vm2, %v325_v15, %v327_v14 }
  0x89   : > { %v935_v22 = vpop.permute.xlu1 %934 }
  0x8b   : > { %v329_v17 = vpop.permute.xlu0 %328 }
  0x8c   : > { %3500 = vmatpush3.msk.msra.mxu1 %vm337_vm1, %v329_v17  ;;  %v332_v18 = vsel %vm330_vm2, %v327_v14, %v329_v17 }
  0x8d   : > { %3353 = vmatprep.subr.msk.mxu0 %vm337_vm1, %v332_v18  ;;  %3502 = vmatmul.mubr.msk.f32.vlgmr.msra.gmra.mrb[0].mxu1 %vm333_vm3, %v3352_v16  ;;  %v933_v25 = vpop.permute.xlu1 %932 }
  0x8e   : > { %3354 = vmatpush1.msk.msra.mxu0 %vm337_vm1, %v331_v19  ;;  %3504 = vmatprep.subr.mxu1 %v3696_v0  ;;  %v939_v31 = vsel %vm938_vm4, %v933_v25, %v935_v22 }
  0x8f   : > { %3355 = vmatmul.mubr.msk.f32.vlgmr.msra.gmra.mrb[0].mxu0 %vm333_vm3, %v3352_v16  ;;  %3358 = vmatprep.subr.msk.mxu0 %vm337_vm1, %v3775_v2  ;;  %v937_v24 = vpop.permute.xlu0 %936 }
  0x90   : > { %3505 = vmatpush3.msk.msra.mxu1 %vm337_vm1, %v3779_v3  ;;  %3359 = vmatpush1.msk.msra.mxu0 %vm337_vm1, %v3770_v1  ;;  %v940_v26 = vsel %vm938_vm4, %v935_v22, %v937_v24 }
  0x91   : > { %3506 = vmatprep.mubr.msk.f32.mxu1 %vm3697_vm0, %v3696_v0  ;;  %3509 = vmatprep.subr.mxu1 %v3696_v0  ;;  %v1255_v30 = vpop.permute.xlu1 %1254 }
  0x92   : > { %3507 = vmatmul.mubr.msk.f32.vlgmr.msra.gmra.mrb[2].mxu1 %vm333_vm3, %v317_v20  ;;  %3364 = vmatprep.subr.msk.mxu0 %vm337_vm1, %v332_v18 }
  0x93   : > { %3510 = vmatpush3.msk.msra.mxu1 %vm337_vm1, %v329_v17  ;;  %3511 = vmatprep.mubr.msk.f32.mxu1 %vm3697_vm0, %v3696_v0  ;;  %v1253_v28 = vpop.permute.xlu0 %1252 }
  0x94   : > { %558 = vmatprep.mubr.f32.mxu0 %v3696_v0  ;;  %3514 = vmatprep.subr.mxu1 %v3696_v0  ;;  %v1258_v35 = vsel %vm1256_vm5, %v1253_v28, %v1255_v30 }
  0x95   : > { %v1571_v34 = vpop.permute.xlu1 %1570 }
  0x96   : > { %3512 = vmatmul.mubr.msk.f32.vlgmr.msra.gmra.mrb[4].mxu1 %vm333_vm3, %v3363_v21 }
  0x97   : > { %3360 = vmatmul.mubr.msk.f32.vlgmr.msra.gmra.mrb[0].mxu0 %vm333_vm3, %v317_v20  ;;  %3515 = vmatpush3.msk.msra.mxu1 %vm337_vm1, %v3779_v3  ;;  %v1251_v32 = vpop.permute.xlu0 %1250 }
  0x98   : > { %3365 = vmatpush1.msk.msra.mxu0 %vm337_vm1, %v331_v19  ;;  %3516 = vmatprep.mubr.msk.f32.mxu1 %vm3697_vm0, %v3696_v0  ;;  %v1257_v38 = vsel %vm1256_vm5, %v1251_v32, %v1253_v28 }
  0x99   : > { %704 = vmatprep.mubr.f32.mxu0 %v3696_v0  ;;  %3369 = vmatprep.subr.msk.mxu0 %vm337_vm1, %v3775_v2  ;;  %v1569_v39 = vpop.permute.xlu1 %1568 }
  0x9a   : > { %3517 = vmatmul.mubr.msk.f32.vlgmr.msra.gmra.mrb[6].mxu1 %vm333_vm3, %v318_v23  ;;  %3519 = vmatprep.subr.mxu1 %v3696_v0  ;;  %v1575_v45 = vsel %vm1574_vm6, %v1569_v39, %v1571_v34 }
  0x9b   : > { %3366 = vmatmul.mubr.msk.f32.vlgmr.msra.gmra.mrb[2].mxu0 %vm333_vm3, %v3363_v21  ;;  %3520 = vmatpush3.msk.msra.mxu1 %vm337_vm1, %v937_v24  ;;  %v1573_v37 = vpop.permute.xlu0 %1572 }
  0x9c   : > { %3370 = vmatpush1.msk.msra.mxu0 %vm337_vm1, %v3770_v1  ;;  %3521 = vmatprep.mubr.msk.f32.mxu1 %vm3697_vm0, %v3696_v0  ;;  %v1576_v42 = vsel %vm1574_vm6, %v1571_v34, %v1573_v37 }
  0x9d   : > { %3524 = vmatprep.subr.mxu1 %v3696_v0  ;;  %3375 = vmatprep.subr.msk.mxu0 %vm337_vm1, %v940_v26  ;;  %v1891_v44 = vpop.permute.xlu1 %1890 }
  0x9e   : > { %3522 = vmatmul.mubr.msk.f32.vlgmr.msra.gmra.mrb[8].mxu1 %vm333_vm3, %v3374_v27  ;;  %848 = vmatprep.mubr.f32.mxu0 %v3696_v0 }
  0x9f   : > { %3525 = vmatpush3.msk.msra.mxu1 %vm337_vm1, %v937_v24  ;;  %3526 = vmatprep.mubr.msk.f32.mxu1 %vm3697_vm0, %v3696_v0  ;;  %v1889_v41 = vpop.permute.xlu0 %1888 }
  0xa0   : > { %3529 = vmatprep.subr.mxu1 %v3696_v0  ;;  %v1894_v49 = vsel %vm1892_vm7, %v1889_v41, %v1891_v44 }
  0xa1   : > { %v2207_v48 = vpop.permute.xlu1 %2206 }
  0xa2   : > { %3527 = vmatmul.mubr.msk.f32.vlgmr.msra.gmra.mrb[10].mxu1 %vm333_vm3, %v3380_v29 }
  0xa3   : > { %3371 = vmatmul.mubr.msk.f32.vlgmr.msra.gmra.mrb[2].mxu0 %vm333_vm3, %v318_v23  ;;  %3530 = vmatpush3.msk.msra.mxu1 %vm337_vm1, %v1255_v30  ;;  %v1887_v46 = vpop.permute.xlu0 %1886 }
  0xa4   : > { %3376 = vmatpush1.msk.msra.mxu0 %vm337_vm1, %v939_v31  ;;  %3531 = vmatprep.mubr.msk.f32.mxu1 %vm3697_vm0, %v3696_v0  ;;  %v1893_v52 = vsel %vm1892_vm7, %v1887_v46, %v1889_v41 }
  0xa5   : > { %3381 = vmatprep.subr.msk.mxu0 %vm337_vm1, %v940_v26  ;;  %1014 = vmatprep.mubr.f32.mxu0 %v3696_v0  ;;  %v2205_v53 = vpop.permute.xlu1 %2204 }
  0xa6   : > { %3532 = vmatmul.mubr.msk.f32.vlgmr.msra.gmra.mrb[12].mxu1 %vm333_vm3, %v3386_v33  ;;  %3534 = vmatprep.subr.mxu1 %v3696_v0  ;;  %v2211_v59 = vsel %vm2210_vm8, %v2205_v53, %v2207_v48 }
  0xa7   : > { %3377 = vmatmul.mubr.msk.f32.vlgmr.msra.gmra.mrb[0].mxu0 %vm333_vm3, %v3374_v27  ;;  %3535 = vmatpush3.msk.msra.mxu1 %vm337_vm1, %v1255_v30  ;;  %v2209_v51 = vpop.permute.xlu0 %2208 }
  0xa8   : > { %3382 = vmatpush1.msk.msra.mxu0 %vm337_vm1, %v939_v31  ;;  %3536 = vmatprep.mubr.msk.f32.mxu1 %vm3697_vm0, %v3696_v0  ;;  %v2212_v56 = vsel %vm2210_vm8, %v2207_v48, %v2209_v51 }
  0xa9   : > { %3387 = vmatprep.subr.msk.mxu0 %vm337_vm1, %v1258_v35  ;;  %1163 = vmatprep.mubr.f32.mxu0 %v3696_v0  ;;  %v2527_v58 = vpop.permute.xlu1 %2526 }
  0xaa   : > { %3537 = vmatmul.mubr.msk.f32.vlgmr.msra.gmra.mrb[14].mxu1 %vm333_vm3, %v3392_v36  ;;  %3539 = vmatprep.subr.mxu1 %v3696_v0 }
  0xab   : > { %3383 = vmatmul.mubr.msk.f32.vlgmr.msra.gmra.mrb[2].mxu0 %vm333_vm3, %v3380_v29  ;;  %3540 = vmatpush3.msk.msra.mxu1 %vm337_vm1, %v1573_v37  ;;  %v2525_v55 = vpop.permute.xlu0 %2524 }
  0xac   : > { %3388 = vmatpush1.msk.msra.mxu0 %vm337_vm1, %v1257_v38  ;;  %3541 = vmatprep.mubr.msk.f32.mxu1 %vm3697_vm0, %v3696_v0  ;;  %v2530_v62 = vsel %vm2528_vm9, %v2525_v55, %v2527_v58 }
  0xad   : > { %3393 = vmatprep.subr.msk.mxu0 %vm337_vm1, %v1258_v35  ;;  %1332 = vmatprep.mubr.f32.mxu0 %v3696_v0  ;;  %v2843_v1 = vpop.permute.xlu1 %2842 }
  0xae   : > { %3542 = vmatmul.mubr.msk.f32.vlgmr.msra.gmra.mrb[16].mxu1 %vm333_vm3, %v3398_v40  ;;  %3544 = vmatprep.subr.mxu1 %v3696_v0 }
  0xaf   : > { %3389 = vmatmul.mubr.msk.f32.vlgmr.msra.gmra.mrb[0].mxu0 %vm333_vm3, %v3386_v33  ;;  %3545 = vmatpush3.msk.msra.mxu1 %vm337_vm1, %v1573_v37  ;;  %v2523_v60 = vpop.permute.xlu0 %2522 }
  0xb0   : > { %3394 = vmatpush1.msk.msra.mxu0 %vm337_vm1, %v1257_v38  ;;  %3546 = vmatprep.mubr.msk.f32.mxu1 %vm3697_vm0, %v3696_v0  ;;  %v2529_v3 = vsel %vm2528_vm9, %v2523_v60, %v2525_v55 }
  0xb1   : > { %3399 = vmatprep.subr.msk.mxu0 %vm337_vm1, %v1576_v42  ;;  %1481 = vmatprep.mubr.f32.mxu0 %v3696_v0  ;;  %v2841_v5 = vpop.permute.xlu1 %2840 }
  0xb2   : > { %3547 = vmatmul.mubr.msk.f32.vlgmr.msra.gmra.mrb[18].mxu1 %vm333_vm3, %v3404_v43  ;;  %3549 = vmatprep.subr.mxu1 %v3696_v0  ;;  %v2847_v8 = vsel %vm2846_vm10, %v2841_v5, %v2843_v1 }
  0xb3   : > { %3395 = vmatmul.mubr.msk.f32.vlgmr.msra.gmra.mrb[2].mxu0 %vm333_vm3, %v3392_v36  ;;  %3550 = vmatpush3.msk.msra.mxu1 %vm337_vm1, %v1891_v44  ;;  %v2845_v2 = vpop.permute.xlu0 %2844 }
  0xb4   : > { %3400 = vmatpush1.msk.msra.mxu0 %vm337_vm1, %v1575_v45  ;;  %3551 = vmatprep.mubr.msk.f32.mxu1 %vm3697_vm0, %v3696_v0  ;;  %v2848_v6 = vsel %vm2846_vm10, %v2843_v1, %v2845_v2 }
  0xb5   : > { %3405 = vmatprep.subr.msk.mxu0 %vm337_vm1, %v1576_v42  ;;  %1650 = vmatprep.mubr.f32.mxu0 %v3696_v0 }
  0xb6   : > { %3552 = vmatmul.mubr.msk.f32.vlgmr.msra.gmra.mrb[20].mxu1 %vm333_vm3, %v3410_v47  ;;  %3554 = vmatprep.subr.mxu1 %v3696_v0 }
  0xb7   : > { %3401 = vmatmul.mubr.msk.f32.vlgmr.msra.gmra.mrb[0].mxu0 %vm333_vm3, %v3398_v40  ;;  %3555 = vmatpush3.msk.msra.mxu1 %vm337_vm1, %v1891_v44 }
  0xb8   : > { %3406 = vmatpush1.msk.msra.mxu0 %vm337_vm1, %v1575_v45  ;;  %3556 = vmatprep.mubr.msk.f32.mxu1 %vm3697_vm0, %v3696_v0 }
  0xb9   : > { %3411 = vmatprep.subr.msk.mxu0 %vm337_vm1, %v1894_v49  ;;  %1799 = vmatprep.mubr.f32.mxu0 %v3696_v0 }
  0xba   : > { %3557 = vmatmul.mubr.msk.f32.vlgmr.msra.gmra.mrb[22].mxu1 %vm333_vm3, %v3416_v50  ;;  %3559 = vmatprep.subr.mxu1 %v3696_v0 }
  0xbb   : > { %3407 = vmatmul.mubr.msk.f32.vlgmr.msra.gmra.mrb[2].mxu0 %vm333_vm3, %v3404_v43  ;;  %3560 = vmatpush3.msk.msra.mxu1 %vm337_vm1, %v2209_v51 }
  0xbc   : > { %3412 = vmatpush1.msk.msra.mxu0 %vm337_vm1, %v1893_v52  ;;  %3561 = vmatprep.mubr.msk.f32.mxu1 %vm3697_vm0, %v3696_v0 }
  0xbd   : > { %3417 = vmatprep.subr.msk.mxu0 %vm337_vm1, %v1894_v49  ;;  %1968 = vmatprep.mubr.f32.mxu0 %v3696_v0 }
  0xbe   : > { %3562 = vmatmul.mubr.msk.f32.vlgmr.msra.gmra.mrb[24].mxu1 %vm333_vm3, %v3422_v54  ;;  %3564 = vmatprep.subr.mxu1 %v3696_v0 }
  0xbf   : > { %3413 = vmatmul.mubr.msk.f32.vlgmr.msra.gmra.mrb[0].mxu0 %vm333_vm3, %v3410_v47  ;;  %3565 = vmatpush3.msk.msra.mxu1 %vm337_vm1, %v2209_v51 }
  0xc0   : > { %3418 = vmatpush1.msk.msra.mxu0 %vm337_vm1, %v1893_v52  ;;  %3566 = vmatprep.mubr.msk.f32.mxu1 %vm3697_vm0, %v3696_v0 }
  0xc1   : > { %3423 = vmatprep.subr.msk.mxu0 %vm337_vm1, %v2212_v56  ;;  %2117 = vmatprep.mubr.f32.mxu0 %v3696_v0 }
  0xc2   : > { %3567 = vmatmul.mubr.msk.f32.vlgmr.msra.gmra.mrb[26].mxu1 %vm333_vm3, %v3428_v57  ;;  %3569 = vmatprep.subr.mxu1 %v3696_v0 }
  0xc3   : > { %3419 = vmatmul.mubr.msk.f32.vlgmr.msra.gmra.mrb[2].mxu0 %vm333_vm3, %v3416_v50  ;;  %3570 = vmatpush3.msk.msra.mxu1 %vm337_vm1, %v2527_v58 }
  0xc4   : > { %3424 = vmatpush1.msk.msra.mxu0 %vm337_vm1, %v2211_v59  ;;  %3571 = vmatprep.mubr.msk.f32.mxu1 %vm3697_vm0, %v3696_v0 }
  0xc5   : > { %3429 = vmatprep.subr.msk.mxu0 %vm337_vm1, %v2212_v56  ;;  %2286 = vmatprep.mubr.f32.mxu0 %v3696_v0 }
  0xc6   : > { %3572 = vmatmul.mubr.msk.f32.vlgmr.msra.gmra.mrb[28].mxu1 %vm333_vm3, %v3434_v61  ;;  %3574 = vmatprep.subr.mxu1 %v3696_v0 }
  0xc7   : > { %3425 = vmatmul.mubr.msk.f32.vlgmr.msra.gmra.mrb[0].mxu0 %vm333_vm3, %v3422_v54  ;;  %3575 = vmatpush3.msk.msra.mxu1 %vm337_vm1, %v2527_v58  ;;  %v3164_v58 = vpop.permute.xlu0 %3163 }
  0xc8   : > { %3430 = vmatpush1.msk.msra.mxu0 %vm337_vm1, %v2211_v59  ;;  %3576 = vmatprep.mubr.msk.f32.mxu1 %vm3697_vm0, %v3696_v0 }
  0xc9   : > { %3435 = vmatprep.subr.msk.mxu0 %vm337_vm1, %v2530_v62  ;;  %2435 = vmatprep.mubr.f32.mxu0 %v3696_v0 }
  0xca   : > { %3577 = vmatmul.mubr.msk.f32.vlgmr.msra.gmra.mrb[30].mxu1 %vm333_vm3, %v3440_v63  ;;  %3579 = vmatprep.subr.mxu1 %v3696_v0 }
  0xcb   : > { %3431 = vmatmul.mubr.msk.f32.vlgmr.msra.gmra.mrb[2].mxu0 %vm333_vm3, %v3428_v57  ;;  %3580 = vmatpush3.msk.msra.mxu1 %vm337_vm1, %v2845_v2 }
  0xcc   : > { %3436 = vmatpush1.msk.msra.mxu0 %vm337_vm1, %v2529_v3  ;;  %3581 = vmatprep.mubr.msk.f32.mxu1 %vm3697_vm0, %v3696_v0 }
  0xcd   : > { %3441 = vmatprep.subr.msk.mxu0 %vm337_vm1, %v2530_v62  ;;  %2604 = vmatprep.mubr.f32.mxu0 %v3696_v0 }
  0xce   : > { %3582 = vmatmul.mubr.msk.f32.vlgmr.msra.gmra.mrb[32].mxu1 %vm333_vm3, %v3446_v4  ;;  %3584 = vmatprep.subr.mxu1 %v3696_v0 }
  0xcf   : > { %3437 = vmatmul.mubr.msk.f32.vlgmr.msra.gmra.mrb[0].mxu0 %vm333_vm3, %v3434_v61  ;;  %3585 = vmatpush3.msk.msra.mxu1 %vm337_vm1, %v2845_v2 }
  0xd0   : > { %3442 = vmatpush1.msk.msra.mxu0 %vm337_vm1, %v2529_v3  ;;  %3586 = vmatprep.mubr.msk.f32.mxu1 %vm3697_vm0, %v3696_v0 }
  0xd1   : > { %3447 = vmatprep.subr.msk.mxu0 %vm337_vm1, %v2848_v6  ;;  %2753 = vmatprep.mubr.f32.mxu0 %v3696_v0 }
  0xd2   : > { %3587 = vmatmul.mubr.msk.f32.vlgmr.msra.gmra.mrb[34].mxu1 %vm333_vm3, %v3452_v7 }
  0xd3   : > { %3443 = vmatmul.mubr.msk.f32.vlgmr.msra.gmra.mrb[2].mxu0 %vm333_vm3, %v3440_v63 }
  0xd4   : > { %3448 = vmatpush1.msk.msra.mxu0 %vm337_vm1, %v2847_v8  ;;  %2922 = vmatprep.mubr.f32.mxu0 %v3696_v0 }
  0xd5   : > { %3453 = vmatprep.subr.msk.mxu0 %vm337_vm1, %v2848_v6 }
  0xd7   : > { %3449 = vmatmul.mubr.msk.f32.vlgmr.msra.gmra.mrb[0].mxu0 %vm333_vm3, %v3446_v4 }
  0xd8   : > { %3454 = vmatpush1.msk.msra.mxu0 %vm337_vm1, %v2847_v8  ;;  %3071 = vmatprep.mubr.f32.mxu0 %v3696_v0 }
  0xdb   : > { %3455 = vmatmul.mubr.msk.f32.vlgmr.msra.gmra.mrb[2].mxu0 %vm333_vm3, %v3452_v7 }
 0x160   : > { %v481_v9 = vpop.f32.mrb[0].mxu1 }
 0x161   : > { %v3503_v10 = vpop.f32.mrb[1].mxu1 }
 0x165   : > { %v631_v11 = vpop.f32.mrb[2].mxu1 }
 0x166   : > { %v632_v12 = vadd.f32 %v631_v11, %v481_v9  ;;  %v3508_v13 = vpop.f32.mrb[3].mxu1 }
 0x167   : > { %v3155_v13 = vpop.permute.xlu1 %3154 }
 0x169   : > { %v777_v14 = vpop.f32.mrb[4].mxu1 }
 0x16a   : > { %v3513_v15 = vpop.f32.mrb[5].mxu1 }
 0x16d   : > { %v921_v16 = vpop.f32.mrb[6].mxu1 }
 0x16e   : > { %v922_v17 = vadd.f32 %v921_v16, %v777_v14  ;;  %v3518_v18 = vpop.f32.mrb[7].mxu1 }
 0x171   : > { %v1087_v19 = vpop.f32.mrb[8].mxu1 }
 0x172   : > { %v1093_v20 = vadd.f32 %v1087_v19, %v632_v12  ;;  %v3523_v21 = vpop.f32.mrb[9].mxu1 }
 0x175   : > { %v1236_v22 = vpop.f32.mrb[10].mxu1 }
 0x176   : > { %v1242_v23 = vadd.f32 %v1236_v22, %v922_v17  ;;  %v3528_v24 = vpop.f32.mrb[11].mxu1 }
 0x179   : > { %v1405_v25 = vpop.f32.mrb[12].mxu1 }
 0x17a   : > { %v1411_v0 = vadd.f32 %v1405_v25, %v1093_v20  ;;  %v3533_v26 = vpop.f32.mrb[13].mxu1 }
 0x17d   : > { %v1554_v27 = vpop.f32.mrb[14].mxu1 }
 0x17e   : > { %v1560_v28 = vadd.f32 %v1554_v27, %v1242_v23  ;;  %v3538_v29 = vpop.f32.mrb[15].mxu1 }
 0x181   : > { %v1723_v30 = vpop.f32.mrb[16].mxu1 }
 0x182   : > { %v1729_v31 = vadd.f32 %v1723_v30, %v1411_v0  ;;  %v3543_v32 = vpop.f32.mrb[17].mxu1 }
 0x185   : > { %v1872_v33 = vpop.f32.mrb[18].mxu1 }
 0x186   : > { %v1878_v34 = vadd.f32 %v1872_v33, %v1560_v28  ;;  %v3548_v35 = vpop.f32.mrb[19].mxu1 }
 0x189   : > { %v2041_v36 = vpop.f32.mrb[20].mxu1 }
 0x18a   : > { %v2047_v37 = vadd.f32 %v2041_v36, %v1729_v31  ;;  %v3553_v38 = vpop.f32.mrb[21].mxu1 }
 0x18d   : > { %v2190_v39 = vpop.f32.mrb[22].mxu1 }
 0x18e   : > { %v2196_v40 = vadd.f32 %v2190_v39, %v1878_v34  ;;  %v3558_v41 = vpop.f32.mrb[23].mxu1 }
 0x191   : > { %v2359_v42 = vpop.f32.mrb[24].mxu1 }
 0x192   : > { %v2365_v43 = vadd.f32 %v2359_v42, %v2047_v37  ;;  %v3563_v44 = vpop.f32.mrb[25].mxu1 }
 0x195   : > { %v2508_v45 = vpop.f32.mrb[26].mxu1 }
 0x196   : > { %v2514_v46 = vadd.f32 %v2508_v45, %v2196_v40  ;;  %v3568_v47 = vpop.f32.mrb[27].mxu1 }
 0x199   : > { %v2677_v48 = vpop.f32.mrb[28].mxu1 }
 0x19a   : > { %v2683_v49 = vadd.f32 %v2677_v48, %v2365_v43  ;;  %v3573_v50 = vpop.f32.mrb[29].mxu1 }
 0x19d   : > { %v2826_v51 = vpop.f32.mrb[30].mxu1 }
 0x19e   : > { %v2832_v52 = vadd.f32 %v2826_v51, %v2514_v46  ;;  %v3578_v53 = vpop.f32.mrb[31].mxu1 }
 0x1a1   : > { %v2995_v54 = vpop.f32.mrb[32].mxu1 }
 0x1a2   : > { %v3001_v55 = vadd.f32 %v2995_v54, %v2683_v49  ;;  %v3583_v56 = vpop.f32.mrb[33].mxu1 }
 0x1a4   : > { %v3159_v15 = vadd.f32 %v3155_v13, %v3001_v55 }
 0x1a5   : > { %v3144_v57 = vpop.f32.mrb[34].mxu1 }
 0x1a6   : > { %v3150_v59 = vadd.f32 %v3144_v57, %v2832_v52  ;;  %v3588_v60 = vpop.f32.mrb[35].mxu1 }
 0x1a8   : > { %v3168_v61 = vadd.f32 %v3164_v58, %v3150_v59 }
 0x1aa   : > { %v3460_v62 = vmul.f32 -1.442695, %v3168_v61  ;;  %v2924_v63 = vpop.f32.mrb[0].mxu0 }
 0x1ab   : > { %v2926_v1 = vpop.f32.mrb[1].mxu0  ;;  %v3157_v18 = vadd.f32 %v3155_v13, %v2924_v63 }
 0x1ac   : > { %3660 = vpow2.f32 %v3460_v62  ;;  %v3158_v20 = vadd.f32 %v3155_v13, %v2926_v1 }
 0x1ae   : > { %v3073_v2 = vpop.f32.mrb[2].mxu0 }
 0x1af   : > { %v3166_v3 = vadd.f32 %v3164_v58, %v3073_v2  ;;  %v3075_v4 = vpop.f32.mrb[3].mxu0 }
 0x1b0   : > { %v3167_v5 = vadd.f32 %v3164_v58, %v3075_v4 }
 0x1b1   : > { %v3458_v6 = vmul.f32 -1.442695, %v3166_v3 }
 0x1b2   : > { %v3459_v7 = vmul.f32 -1.442695, %v3167_v5 }
 0x1b3   : > { %3662 = vpow2.f32 %v3458_v6 }
 0x1b4   : > { %3664 = vpow2.f32 %v3459_v7 }
 0x1b6   : > { %v3661_v8 = vpop.eup %3660 }
 0x1b7   : > { %v3180_v9 = vadd.f32 1.0, %v3661_v8 }
 0x1b9   : > { %3666 = vrcp.f32 %v3180_v9 }
 0x1bd   : > { %v3663_v10 = vpop.eup %3662 }
 0x1be   : > { %v3665_v11 = vpop.eup %3664  ;;  %v3178_v12 = vadd.f32 1.0, %v3663_v10 }
 0x1bf   : > { %v3179_v14 = vadd.f32 1.0, %v3665_v11 }
 0x1c0   : > { %3668 = vrcp.f32 %v3178_v12 }
 0x1c1   : > { %3670 = vrcp.f32 %v3179_v14 }
 0x1c3   : > { %v3667_v16 = vpop.eup %3666 }
 0x1c4   : > { %v3189_v17 = vmul.f32 %v3667_v16, %v3159_v15 }
 0x1c6   : > { %3196 = vst.msk [vmem:[%s314_s11 + $0x8] sm:$0xf] %vm3195_vm11, %v3189_v17 }
 0x1ca   : > { %v3669_v19 = vpop.eup %3668 }
 0x1cb   : > { %v3671_v21 = vpop.eup %3670  ;;  %v3187_v22 = vmul.f32 %v3669_v19, %v3157_v18 }
 0x1cc   : > { %v3188_v23 = vmul.f32 %v3671_v21, %v3158_v20 }
 0x1ce   : > { %v3192_v24 = vcombine.low %v3187_v22, %v3188_v23 }
 0x1d0   : > { %3194 = vst [vmem:[%s314_s11] sm:$0xff] %v3192_v24 }
 0x1d1 PF: > { %s15_s20 = sadd.s32 1, %s3694_s20   ;;  %s4049_s18 = smov %s3690_s19 }
 0x1d2   : > { %p12_p5 = scmp.ge.s32.totalorder %s15_s20, 4   ;;  %s4050_s19 = smov %s4052_s21 }
 0x1d4   :  { %14 = sbr.rel (!%p12_p5) target bundleno = 2 (0x2), region = 98 }

</bundles_post_ra>
